<compile_context>
chip_gen: v7x
topology: tpu7x:2x2x1
jax: 0.10.0
libtpu: 0.0.40
codegen_flags: <defaults>
</compile_context>

<pallas_src>
import jax
import jax.numpy as jnp
from jax.experimental import pallas as pl
from jax.experimental.pallas import tpu as pltpu


def _round_up(n, m):
    return ((n + m - 1) // m) * m


def _mlp_kernel(x_ref, w1_ref, b1_ref, w2_ref, b2_ref, w3_ref, b3_ref, o_ref):
    # Entire 3-layer MLP fused per batch tile. Matmul inputs are bf16, accumulation f32.
    x = x_ref[...]                                                       # (bm, in_dim) bf16
    h1 = jnp.dot(x, w1_ref[...], preferred_element_type=jnp.float32)     # (bm, H) f32
    h1 = jnp.maximum(h1 + b1_ref[...], 0.0).astype(jnp.bfloat16)         # ReLU, back to bf16
    h2 = jnp.dot(h1, w2_ref[...], preferred_element_type=jnp.float32)    # (bm, H) f32
    h2 = jnp.maximum(h2 + b2_ref[...], 0.0).astype(jnp.bfloat16)
    out = jnp.dot(h2, w3_ref[...], preferred_element_type=jnp.float32)   # (bm, out_dim) f32
    o_ref[...] = (out + b3_ref[...]).astype(o_ref.dtype)


def scale_translate_forward(x, params, *, bm=256):
    """x: (B, in_dim) float32. params: w1,b1,w2,b2,w3,b3 (biases shaped (1, dim))."""
    B, in_dim = x.shape
    H = params["w1"].shape[1]
    out_dim = params["w3"].shape[1]
    out_dtype = x.dtype

    # Adapt the batch tile: keep it a multiple of 8 (sublane), cap at requested bm
    # (default 256: 2 full MXU passes on v6e/v7x, keeps h1/h2 within the vreg file).
    bm_eff = min(bm, _round_up(B, 8))
    B_pad = _round_up(B, bm_eff)
    if B_pad != B:
        x = jnp.pad(x, ((0, B_pad - B), (0, 0)))

    # bf16 matmul inputs, f32 accumulation (biases stay f32).
    x_bf = x.astype(jnp.bfloat16)
    w1 = params["w1"].astype(jnp.bfloat16)
    w2 = params["w2"].astype(jnp.bfloat16)
    w3 = params["w3"].astype(jnp.bfloat16)
    b1, b2, b3 = params["b1"], params["b2"], params["b3"]

    grid = (B_pad // bm_eff,)

    # Replicated (grid-invariant) params: single-buffered — no point double-buffering
    # something whose index_map never changes.
    def rep(shape):
        return pl.BlockSpec(shape, lambda i: (0,) * len(shape),
                            pipeline_mode=pl.Buffered(1))

    out = pl.pallas_call(
        _mlp_kernel,
        out_shape=jax.ShapeDtypeStruct((B_pad, out_dim), out_dtype),
        grid_spec=pltpu.PrefetchScalarGridSpec(
            num_scalar_prefetch=0,
            grid=grid,
            in_specs=[
                pl.BlockSpec((bm_eff, in_dim), lambda i: (i, 0)),  # x: tiled over batch
                rep((in_dim, H)), rep((1, H)),                     # layer 1
                rep((H, H)),      rep((1, H)),                     # layer 2
                rep((H, out_dim)), rep((1, out_dim)),              # layer 3
            ],
            out_specs=pl.BlockSpec((bm_eff, out_dim), lambda i: (i, 0)),
        ),
        compiler_params=pltpu.CompilerParams(
            dimension_semantics=("parallel",),   # batch axis shards across TCs (v7x)
        ),
    )(x_bf, w1, b1, w2, b2, w3, b3)

    return out[:B] if B_pad != B else out


def init_params(key, in_dim, out_dim, n_hidden):
    """Deterministic init mimicking PyTorch nn.Linear default (uniform +/- 1/sqrt(fan_in))."""
    ks = jax.random.split(key, 6)

    def lin(kw, kb, fan_in, fan_out):
        bound = 1.0 / jnp.sqrt(fan_in)
        w = jax.random.uniform(kw, (fan_in, fan_out), jnp.float32, -bound, bound)
        b = jax.random.uniform(kb, (1, fan_out), jnp.float32, -bound, bound)
        return w, b

    w1, b1 = lin(ks[0], ks[1], in_dim, n_hidden)
    w2, b2 = lin(ks[2], ks[3], n_hidden, n_hidden)
    w3, b3 = lin(ks[4], ks[5], n_hidden, out_dim)
    return {"w1": w1, "b1": b1, "w2": w2, "b2": b2, "w3": w3, "b3": b3}


def reference_forward_f32(x, p):
    h1 = jnp.maximum(x @ p["w1"] + p["b1"], 0.0)
    h2 = jnp.maximum(h1 @ p["w2"] + p["b2"], 0.0)
    return h2 @ p["w3"] + p["b3"]


def reference_forward_bf16(x, p):
    """Matches the kernel's arithmetic (bf16 matmul inputs, f32 accumulation)."""
    bf = jnp.bfloat16
    h1 = jnp.dot(x.astype(bf), p["w1"].astype(bf), preferred_element_type=jnp.float32)
    h1 = jnp.maximum(h1 + p["b1"], 0.0).astype(bf)
    h2 = jnp.dot(h1, p["w2"].astype(bf), preferred_element_type=jnp.float32)
    h2 = jnp.maximum(h2 + p["b2"], 0.0).astype(bf)
    out = jnp.dot(h2, p["w3"].astype(bf), preferred_element_type=jnp.float32)
    return out + p["b3"]


if __name__ == "__main__":
    # Small shapes consistent with ScaleTranslate(in_dim=32, out_dim=32, n_hidden=128)
    B, in_dim, out_dim, n_hidden = 8, 32, 32, 128

    key = jax.random.PRNGKey(0)
    kx, kp = jax.random.split(key)
    x = jax.random.normal(kx, (B, in_dim), jnp.float32)
    params = init_params(kp, in_dim, out_dim, n_hidden)

    out = scale_translate_forward(x, params)
    out = jax.block_until_ready(out)
    assert out.shape == (B, out_dim)

    # Exact-arithmetic check against a bf16-matched reference.
    ref_bf16 = reference_forward_bf16(x, params)
    assert jnp.allclose(out, ref_bf16, atol=1e-3, rtol=1e-3)

    # Semantic check against the full-f32 PyTorch-equivalent forward.
    ref_f32 = reference_forward_f32(x, params)
    assert jnp.allclose(out, ref_f32, atol=5e-2, rtol=5e-2)

    print("KERNEL_OK")
</pallas_src>

<mosaic_0001>
module attributes {stable_mosaic.version = 11 : i64} {
  func.func @_mlp_kernel(%arg0: i32, %arg1: memref<8x32xbf16, #tpu.memory_space<vmem>>, %arg2: memref<32x128xbf16, #tpu.memory_space<vmem>>, %arg3: memref<1x128xf32, #tpu.memory_space<vmem>>, %arg4: memref<128x128xbf16, #tpu.memory_space<vmem>>, %arg5: memref<1x128xf32, #tpu.memory_space<vmem>>, %arg6: memref<128x32xbf16, #tpu.memory_space<vmem>>, %arg7: memref<1x32xf32, #tpu.memory_space<vmem>>, %arg8: memref<8x32xf32, #tpu.memory_space<vmem>>) attributes {dimension_semantics = [#tpu.dimension_semantics<parallel>], iteration_bounds = array<i64: 1>, scalar_prefetch = 0 : i64, scratch_operands = 0 : i64, tpu.core_type = #tpu.core_type<tc>, window_params = [{transform_indices = @transform_0, window_bounds = array<i64: 8, 32>}, {pipeline_mode = #tpu.pipeline_mode<synchronous>, transform_indices = @transform_1, window_bounds = array<i64: 32, 128>}, {pipeline_mode = #tpu.pipeline_mode<synchronous>, transform_indices = @transform_2, window_bounds = array<i64: 1, 128>}, {pipeline_mode = #tpu.pipeline_mode<synchronous>, transform_indices = @transform_3, window_bounds = array<i64: 128, 128>}, {pipeline_mode = #tpu.pipeline_mode<synchronous>, transform_indices = @transform_4, window_bounds = array<i64: 1, 128>}, {pipeline_mode = #tpu.pipeline_mode<synchronous>, transform_indices = @transform_5, window_bounds = array<i64: 128, 32>}, {pipeline_mode = #tpu.pipeline_mode<synchronous>, transform_indices = @transform_6, window_bounds = array<i64: 1, 32>}, {transform_indices = @transform_7, window_bounds = array<i64: 8, 32>}]} {
    %c0 = arith.constant 0 : index
    %c0_0 = arith.constant 0 : index
    %0 = vector.load %arg1[%c0, %c0_0] : memref<8x32xbf16, #tpu.memory_space<vmem>>, vector<8x32xbf16>
    %c0_1 = arith.constant 0 : index
    %c0_2 = arith.constant 0 : index
    %1 = vector.load %arg2[%c0_1, %c0_2] : memref<32x128xbf16, #tpu.memory_space<vmem>>, vector<32x128xbf16>
    %cst = arith.constant dense<0.000000e+00> : vector<8x128xf32>
    %2 = tpu.matmul %0, %1, %cst {dimension_numbers = #tpu.dot_dimension_numbers<[1], [0], [0], [1], [0, 0, 1, 1], [], []>} : vector<8x32xbf16>, vector<32x128xbf16>, vector<8x128xf32> -> vector<8x128xf32>
    %c0_3 = arith.constant 0 : index
    %c0_4 = arith.constant 0 : index
    %3 = vector.load %arg3[%c0_3, %c0_4] : memref<1x128xf32, #tpu.memory_space<vmem>>, vector<1x128xf32>
    %4 = vector.broadcast %3 : vector<1x128xf32> to vector<8x128xf32>
    %5 = arith.addf %2, %4 : vector<8x128xf32>
    %cst_5 = arith.constant 0.000000e+00 : f32
    %6 = vector.broadcast %cst_5 : f32 to vector<8x128xf32>
    %7 = arith.maximumf %5, %6 : vector<8x128xf32>
    %8 = arith.truncf %7 : vector<8x128xf32> to vector<8x128xbf16>
    %c0_6 = arith.constant 0 : index
    %c0_7 = arith.constant 0 : index
    %9 = vector.load %arg4[%c0_6, %c0_7] : memref<128x128xbf16, #tpu.memory_space<vmem>>, vector<128x128xbf16>
    %cst_8 = arith.constant dense<0.000000e+00> : vector<8x128xf32>
    %10 = tpu.matmul %8, %9, %cst_8 {dimension_numbers = #tpu.dot_dimension_numbers<[1], [0], [0], [1], [0, 0, 1, 1], [], []>} : vector<8x128xbf16>, vector<128x128xbf16>, vector<8x128xf32> -> vector<8x128xf32>
    %c0_9 = arith.constant 0 : index
    %c0_10 = arith.constant 0 : index
    %11 = vector.load %arg5[%c0_9, %c0_10] : memref<1x128xf32, #tpu.memory_space<vmem>>, vector<1x128xf32>
    %12 = vector.broadcast %11 : vector<1x128xf32> to vector<8x128xf32>
    %13 = arith.addf %10, %12 : vector<8x128xf32>
    %cst_11 = arith.constant 0.000000e+00 : f32
    %14 = vector.broadcast %cst_11 : f32 to vector<8x128xf32>
    %15 = arith.maximumf %13, %14 : vector<8x128xf32>
    %16 = arith.truncf %15 : vector<8x128xf32> to vector<8x128xbf16>
    %c0_12 = arith.constant 0 : index
    %c0_13 = arith.constant 0 : index
    %17 = vector.load %arg6[%c0_12, %c0_13] : memref<128x32xbf16, #tpu.memory_space<vmem>>, vector<128x32xbf16>
    %cst_14 = arith.constant dense<0.000000e+00> : vector<8x32xf32>
    %18 = tpu.matmul %16, %17, %cst_14 {dimension_numbers = #tpu.dot_dimension_numbers<[1], [0], [0], [1], [0, 0, 1, 1], [], []>} : vector<8x128xbf16>, vector<128x32xbf16>, vector<8x32xf32> -> vector<8x32xf32>
    %c0_15 = arith.constant 0 : index
    %c0_16 = arith.constant 0 : index
    %19 = vector.load %arg7[%c0_15, %c0_16] : memref<1x32xf32, #tpu.memory_space<vmem>>, vector<1x32xf32>
    %20 = vector.broadcast %19 : vector<1x32xf32> to vector<8x32xf32>
    %21 = arith.addf %18, %20 : vector<8x32xf32>
    %c0_17 = arith.constant 0 : index
    %c0_18 = arith.constant 0 : index
    %22 = vector.load %arg8[%c0_17, %c0_18] : memref<8x32xf32, #tpu.memory_space<vmem>>, vector<8x32xf32>
    tpu.vector_store %arg8[%c0_17, %c0_18], %21 {strides = array<i32>} : memref<8x32xf32, #tpu.memory_space<vmem>>, vector<8x32xf32>,
    return
  }
  func.func @transform_0(%arg0: i32) -> (i32, i32) {
    %c0_i32 = arith.constant 0 : i32
    %c0_i32_0 = arith.constant 0 : i32
    return %arg0, %c0_i32 : i32, i32
  }
  func.func @transform_1(%arg0: i32) -> (i32, i32) {
    %c0_i32 = arith.constant 0 : i32
    %c0_i32_0 = arith.constant 0 : i32
    %c0_i32_1 = arith.constant 0 : i32
    return %c0_i32, %c0_i32_0 : i32, i32
  }
  func.func @transform_2(%arg0: i32) -> (i32, i32) {
    %c0_i32 = arith.constant 0 : i32
    %c0_i32_0 = arith.constant 0 : i32
    %c0_i32_1 = arith.constant 0 : i32
    return %c0_i32, %c0_i32_0 : i32, i32
  }
  func.func @transform_3(%arg0: i32) -> (i32, i32) {
    %c0_i32 = arith.constant 0 : i32
    %c0_i32_0 = arith.constant 0 : i32
    %c0_i32_1 = arith.constant 0 : i32
    return %c0_i32, %c0_i32_0 : i32, i32
  }
  func.func @transform_4(%arg0: i32) -> (i32, i32) {
    %c0_i32 = arith.constant 0 : i32
    %c0_i32_0 = arith.constant 0 : i32
    %c0_i32_1 = arith.constant 0 : i32
    return %c0_i32, %c0_i32_0 : i32, i32
  }
  func.func @transform_5(%arg0: i32) -> (i32, i32) {
    %c0_i32 = arith.constant 0 : i32
    %c0_i32_0 = arith.constant 0 : i32
    %c0_i32_1 = arith.constant 0 : i32
    return %c0_i32, %c0_i32_0 : i32, i32
  }
  func.func @transform_6(%arg0: i32) -> (i32, i32) {
    %c0_i32 = arith.constant 0 : i32
    %c0_i32_0 = arith.constant 0 : i32
    %c0_i32_1 = arith.constant 0 : i32
    return %c0_i32, %c0_i32_0 : i32, i32
  }
  func.func @transform_7(%arg0: i32) -> (i32, i32) {
    %c0_i32 = arith.constant 0 : i32
    %c0_i32_0 = arith.constant 0 : i32
    return %arg0, %c0_i32 : i32, i32
  }
}

</mosaic_0001>

<bundles_post_ra>
// kernel: tpu_custom_call.1
= control target key start
LH: loop header
LB: loop body
LE: loop exit
PB: predicated region body
PF: predicated region fallthrough
CT: control target
= control target key end

     0   :  { %12 = vsyncpa [#allocation3], 0  ;;  %s668_s0 = inlined_call_operand.hbm [shape: bf16[8,32], index: 0, kind: input, shape index: {}]   ;;  %s669_s1 = inlined_call_operand.vmem [shape: bf16[32,128], index: 1, kind: input, shape index: {}]   ;;  %s670_s2 = inlined_call_operand.vmem [shape: f32[1,128], index: 2, kind: input, shape index: {}]   ;;  %s671_s3 = inlined_call_operand.vmem [shape: bf16[128,128], index: 3, kind: input, shape index: {}]   ;;  %s672_s4 = inlined_call_operand.vmem [shape: f32[1,128], index: 4, kind: input, shape index: {}]   ;;  %s673_s5 = inlined_call_operand.vmem [shape: bf16[128,32], index: 5, kind: input, shape index: {}]   ;;  %s674_s6 = inlined_call_operand.vmem [shape: f32[1,32], index: 6, kind: input, shape index: {}]   ;;  %s675_s7 = inlined_call_operand.hbm [shape: f32[8,32], index: 7, kind: output, shape index: {}]  }
   0x1   :  { %13 = vsyncpa [#allocation4], 0  ;;  %s511_s24 = smov [#allocation2]   ;;  %s463_s28 = scalar_lea.hbm %s668_s0, 64 }
   0x2   :  { %s20_s25 = sshll.u32 %s511_s24, 4  ;;  %p464_p0 = scmp.ne.s32.totalorder %s668_s0, %s463_s28  ;;  %s21_s25 = int_to_ptr.vmem [resolvable:$true] %s20_s25 }
   0x3   :  { %p467_p1 = scmp.lt.u32.totalorder %s463_s28, %s668_s0 }
   0x5   :  { %p469_p2 = pnand %p467_p1, %p464_p0 }
   0x7   :  { %472 = shalt.err (!%p469_p2)
}
   0x8   :  { %s473_s10 = scalar_lea.vmem %s21_s25, 64  ;;  %p478_p4 = scmp.lt.s32.totalorder %s21_s25, %s21_s25 }
   0x9   :  { %p474_p3 = scmp.ne.s32.totalorder %s21_s25, %s473_s10  ;;  %p479_p5 = scmp.lt.s32.totalorder %s473_s10, %s473_s10 }
   0xb   :  { %p480_p6 = por %p479_p5, %p478_p4 }
   0xd   :  { %p481_p7 = pnand %p480_p6, %p474_p3 }
   0xf   :  { %484 = shalt.err (!%p481_p7)
}
  0x10   :  { %23 = dma.hbm_to_vmem [thread:$0]  %s668_s0, 64, %s21_s25, [#allocation3]  }
  0x11   :  { %507 = dma.done.wait [#allocation3], 64  }
  0x12   :  { %508 = vsyncadd [#allocation3], 4294967232  ;;  %v512_v0 = vmov 0.0   ;;  %vm513_vm0 = vmmov 0   ;;  %v445_v1 = vld [vmem:[%s669_s1] sm:$0xff]   ;;  %v446_v2 = vld [vmem:[%s669_s1 + $0x8] sm:$0xff]  }
  0x13   :  { %393 = vmatprep.subr.bf16.mxu0 %v512_v0  ;;  %397 = vmatprep.mubr.msk.bf16.mxu0 %vm513_vm0, %v512_v0  ;;  %v447_v3 = vld [vmem:[%s671_s3] sm:$0xff]   ;;  %vm64_vm1 = vcmask 261120   ;;  %v448_v4 = vld [vmem:[%s671_s3 + $0x8] sm:$0xff]   ;;  %v449_v6 = vld [vmem:[%s671_s3 + $0x10] sm:$0xff]   ;;  %s514_s26 = smov [#allocation5]  }
  0x14   :  { %401 = vmatprep.subr.bf16.mxu1 %v512_v0  ;;  %417 = vmatprep.mubr.msk.bf16.mxu1 %vm513_vm0, %v512_v0  ;;  %v40_v5 = vld [vmem:[#allocation2] sm:$0xf]  ;;  %v450_v7 = vld [vmem:[%s671_s3 + $0x18] sm:$0xff]   ;;  %v452_v9 = vld [vmem:[%s671_s3 + $0x28] sm:$0xff]   ;;  %s341_s27 = sshll.u32 %s514_s26, 4  ;;  %s342_s27 = int_to_ptr.vmem [resolvable:$true] %s341_s27 }
  0x15   :  { %394 = vmatpush3.bf16.msra.mxu0 %v445_v1  ;;  %402 = vmatpush3.bf16.msra.mxu1 %v447_v3  ;;  %v451_v8 = vld [vmem:[%s671_s3 + $0x20] sm:$0xff]   ;;  %v453_v10 = vld [vmem:[%s671_s3 + $0x30] sm:$0xff]   ;;  %v454_v11 = vld [vmem:[%s671_s3 + $0x38] sm:$0xff]   ;;  %p490_p9 = scmp.lt.s32.totalorder %s342_s27, %s342_s27 }
  0x16   :  { %395 = vmatprep.subr.bf16.mxu0 %v512_v0  ;;  %403 = vmatprep.subr.bf16.mxu1 %v512_v0  ;;  %v455_v12 = vld [vmem:[%s673_s5] sm:$0xff]   ;;  %v456_v13 = vld [vmem:[%s673_s5 + $0x8] sm:$0xff]   ;;  %v457_v14 = vld [vmem:[%s673_s5 + $0x10] sm:$0xff]  }
  0x17   :  { %v458_v15 = vld [vmem:[%s673_s5 + $0x18] sm:$0xff]   ;;  %v459_v16 = vld [vmem:[%s673_s5 + $0x20] sm:$0xff]   ;;  %v460_v17 = vld [vmem:[%s673_s5 + $0x28] sm:$0xff]  }
  0x18   :  { %v350_v18 = vld [vmem:[%s670_s2] ss:$0 sm:$0xff]  ;;  %v461_v26 = vld [vmem:[%s673_s5 + $0x30] sm:$0xff]   ;;  %v462_v27 = vld [vmem:[%s673_s5 + $0x38] sm:$0xff]  }
  0x19   :  { %396 = vmatpush3.bf16.msra.mxu0 %v446_v2  ;;  %404 = vmatpush3.bf16.msra.mxu1 %v448_v4  ;;  %v354_v28 = vld [vmem:[%s672_s4] ss:$0 sm:$0xff]  ;;  %s485_s4 = scalar_lea.vmem %s342_s27, 128 }
  0x1a   :  { %421 = vmatprep.subr.bf16.mxu0 %v512_v0  ;;  %405 = vmatprep.subr.bf16.mxu1 %v512_v0  ;;  %v363_v36 = vld [vmem:[%s674_s6] ss:$0 sm:$0xff]  ;;  %p486_p8 = scmp.ne.s32.totalorder %s342_s27, %s485_s4  ;;  %p491_p10 = scmp.lt.s32.totalorder %s485_s4, %s485_s4 }
  0x1c   :  { %398 = vmatmul.mubr.msk.bf16.vlgmr.msra.gmra.mrb[0].mxu0 %vm64_vm1, %v40_v5  ;;  %p492_p11 = por %p491_p10, %p490_p9 }
  0x1d   :  { %437 = vmatprep.mubr.msk.bf16.mxu0 %vm513_vm0, %v512_v0  ;;  %406 = vmatpush3.bf16.msra.mxu1 %v449_v6 }
  0x1e   :  { %407 = vmatprep.subr.bf16.mxu1 %v512_v0  ;;  %422 = vmatpush3.bf16.msra.mxu0 %v455_v12  ;;  %p493_p12 = pnand %p492_p11, %p486_p8 }
  0x1f   :  { %423 = vmatprep.subr.bf16.mxu0 %v512_v0 }
  0x21   :  { %408 = vmatpush3.bf16.msra.mxu1 %v450_v7 }
  0x22   :  { %409 = vmatprep.subr.bf16.mxu1 %v512_v0  ;;  %424 = vmatpush3.bf16.msra.mxu0 %v456_v13 }
  0x23   :  { %425 = vmatprep.subr.bf16.mxu0 %v512_v0 }
  0x25   :  { %410 = vmatpush3.bf16.msra.mxu1 %v451_v8 }
  0x26   :  { %411 = vmatprep.subr.bf16.mxu1 %v512_v0  ;;  %426 = vmatpush3.bf16.msra.mxu0 %v457_v14 }
  0x27   :  { %427 = vmatprep.subr.bf16.mxu0 %v512_v0 }
  0x29   :  { %412 = vmatpush3.bf16.msra.mxu1 %v452_v9 }
  0x2a   :  { %413 = vmatprep.subr.bf16.mxu1 %v512_v0  ;;  %428 = vmatpush3.bf16.msra.mxu0 %v458_v15 }
  0x2b   :  { %429 = vmatprep.subr.bf16.mxu0 %v512_v0 }
  0x2d   :  { %414 = vmatpush3.bf16.msra.mxu1 %v453_v10 }
  0x2e   :  { %415 = vmatprep.subr.bf16.mxu1 %v512_v0  ;;  %430 = vmatpush3.bf16.msra.mxu0 %v459_v16 }
  0x2f   :  { %431 = vmatprep.subr.bf16.mxu0 %v512_v0 }
  0x31   :  { %416 = vmatpush3.bf16.msra.mxu1 %v454_v11 }
  0x32   :  { %432 = vmatpush3.bf16.msra.mxu0 %v460_v17 }
  0x33   :  { %433 = vmatprep.subr.bf16.mxu0 %v512_v0 }
  0x36   :  { %434 = vmatpush3.bf16.msra.mxu0 %v461_v26 }
  0x37   :  { %435 = vmatprep.subr.bf16.mxu0 %v512_v0 }
  0x3a   :  { %436 = vmatpush3.bf16.msra.mxu0 %v462_v27 }
  0xef   :  { %v102_v19 = vpop.f32.mrb[0].mxu0 }
  0xf0   :  { %v103_v20 = vadd.f32 %v350_v18, %v102_v19  ;;  %v399_v21 = vpop.f32.mrb[1].mxu0 }
  0xf1   :  { %v105_v22 = vpop.f32.mrb[2].mxu0 }
  0xf2   :  { %v108_v23 = vmax.f32 %v103_v20, 0.0  ;;  %v400_v24 = vpop.f32.mrb[3].mxu0 }
  0xf4   :  { %v109_v25 = vpack.c.bf16 %v108_v23, %v108_v23 }
  0xf6   :  { %418 = vmatmul.mubr.bf16.vlgmr.msra.gmra.mrb[0].mxu1 %v109_v25 }
 0x1c9   :  { %v215_v29 = vpop.f32.mrb[0].mxu1 }
 0x1ca   :  { %v216_v30 = vadd.f32 %v354_v28, %v215_v29  ;;  %v419_v31 = vpop.f32.mrb[1].mxu1 }
 0x1cb   :  { %v218_v32 = vpop.f32.mrb[2].mxu1 }
 0x1cc   :  { %v221_v33 = vmax.f32 %v216_v30, 0.0  ;;  %v420_v34 = vpop.f32.mrb[3].mxu1 }
 0x1ce   :  { %v222_v35 = vpack.c.bf16 %v221_v33, %v221_v33 }
 0x1d0   :  { %438 = vmatmul.mubr.bf16.vlgmr.msra.gmra.mrb[4].mxu0 %v222_v35 }
 0x2a3   :  { %v328_v37 = vpop.f32.mrb[4].mxu0 }
 0x2a4   :  { %v329_v38 = vadd.f32 %v363_v36, %v328_v37  ;;  %v439_v39 = vpop.f32.mrb[5].mxu0 }
 0x2a5   :  { %v331_v40 = vpop.f32.mrb[6].mxu0 }
 0x2a6   :  { %334 = vst.msk [vmem:[#allocation5] sm:$0xff] %vm64_vm1, %v329_v38  ;;  %v440_v41 = vpop.f32.mrb[7].mxu0 }
 0x2a7   :  { %496 = shalt.err (!%p493_p12)
}
 0x2a8   :  { %s497_s6 = scalar_lea.hbm %s675_s7, 128 }
 0x2a9   :  { %p498_p13 = scmp.ne.s32.totalorder %s675_s7, %s497_s6  ;;  %p501_p0 = scmp.lt.u32.totalorder %s497_s6, %s675_s7 }
 0x2ab   :  { %p503_p1 = pnand %p501_p0, %p498_p13 }
 0x2ad   :  { %506 = shalt.err (!%p503_p1)
}
 0x2ae   :  { %344 = dma.vmem_to_hbm [thread:$0]  %s342_s27, 128, %s675_s7, [#allocation4]  }
 0x2af   :  { %509 = dma.done.wait [#allocation4], 128  }
 0x2b0   :  { %510 = vsyncadd [#allocation4], 4294967168 }
 0x2b1   :  { %348 = vsyncpa [#allocation3], 1 }
 0x2b2   :  { %349 = vsyncpa [#allocation4], 1 }

</bundles_post_ra>
